<compile_context>
chip_gen: v6e
topology: v6e:2x2x1
jax: 0.10.0
libtpu: 0.0.40
codegen_flags: <defaults>
</compile_context>

<pallas_src>
import functools

import jax
import jax.numpy as jnp
from jax import lax
from jax.experimental import pallas as pl
from jax.experimental.pallas import tpu as pltpu


def classifier_kernel(x_ref, w_ref, b_ref, o_ref, acc_ref, *,
                      b_tile, C, K, hw_tile, hw_total, need_mask):
    # x_ref : (b_tile*C, hw_tile) native dtype — lane-dense spatial slab
    # w_ref : (C, K)   f32 — weight pre-scaled by 1/(H*W)
    # b_ref : (1, K)   f32
    # o_ref : (b_tile, K) f32
    # acc_ref: (b_tile*C, 1) f32 VMEM scratch, resident across HW tiles
    k = pl.program_id(1)

    @pl.when(k == 0)
    def _init():
        acc_ref[...] = jnp.zeros_like(acc_ref)

    # Per-tile cast keeps HBM traffic at native width; the mean scale is folded
    # into the weight so the big tile only sees a sum-reduce along lanes.
    x = x_ref[...].astype(jnp.float32)
    if need_mask:  # static flag: only emitted when H*W has a ragged tail
        lane = lax.broadcasted_iota(jnp.int32, x.shape, 1)
        x = jnp.where(k * hw_tile + lane < hw_total, x, 0.0)
    acc_ref[...] += jnp.sum(x, axis=-1, keepdims=True)

    @pl.when(k == pl.num_programs(1) - 1)
    def _finalize():
        # Vectorized epilogue: C (=3) strided gathers + broadcast FMAs and a
        # single (b_tile, K) store — no per-row unroll, stays hidden under the
        # next block's DMA even for large b_tile.
        w = w_ref[...]                 # (C, K)
        out = b_ref[...]               # (1, K) — broadcasts against (b_tile, K)
        for c in range(C):             # static, tiny
            pooled_c = acc_ref[pl.ds(c, b_tile, stride=C), :]   # (b_tile, 1)
            out = out + pooled_c * w[c:c + 1, :]                 # (b_tile, K)
        o_ref[...] = out


def _pick_hw_tile(HW, cap=8192):
    """Largest lane-aligned HW tile <= cap. Returns (tile, needs_mask)."""
    if HW <= 256:
        return HW, False                                  # single full-extent block
    top = min(HW, cap)
    aligned_cap = max(128, top - top % 128)
    for t in range(aligned_cap, 127, -128):               # largest 128-aligned divisor
        if HW % t == 0:
            if t >= 1024 or t == aligned_cap:
                return t, False
            break
    # No big aligned divisor: big aligned tile + masked ragged tail.
    return aligned_cap, (HW % aligned_cap != 0)


def _pick_b_tile(B, C, hw_tile, itemsize):
    """Largest batch tile whose x block stays within ~4 MiB while keeping
    >= 2 parallel B-tiles when possible (feeds both v7x TensorCores)."""
    sublane = 32 // itemsize                              # 8 f32 / 16 bf16 / 32 int8
    block_budget = 4 * 1024 * 1024                        # 2x-buffered fits every gen
    valid = [t for t in range(1, B + 1)
             if B % t == 0 and ((t * C) % sublane == 0 or t == B)]
    under = [t for t in valid if t * C * hw_tile * itemsize <= block_budget]
    if under:
        multi = [t for t in under if B // t >= 2]
        return max(multi) if multi else max(under)
    return min(valid)


def classify(x_nchw, weight, bias):
    """x_nchw: (B, C, H, W) float dtype; weight: (C, K); bias: (K,) -> (B, K) f32."""
    B, C, H, W = x_nchw.shape
    K = weight.shape[1]
    HW = H * W

    # Native-dtype lane-dense slab (reshape is layout-free); mean scale folded
    # into the tiny f32 weight on the wrapper side.
    x2d = x_nchw.reshape(B * C, HW)
    w_scaled = weight.astype(jnp.float32) / float(HW)
    bias2d = bias.reshape(1, K).astype(jnp.float32)

    itemsize = x2d.dtype.itemsize
    hw_tile, need_mask = _pick_hw_tile(HW)
    b_tile = _pick_b_tile(B, C, hw_tile, itemsize)
    grid = (B // b_tile, pl.cdiv(HW, hw_tile))

    block_bytes = b_tile * C * hw_tile * itemsize
    # Scoped VMEM: double-buffered x block + scratch with headroom; above the
    # 16 MiB v5e default, within the 64 MiB v7x physical budget.
    vmem_limit = int(min(60 * 2**20, max(32 * 2**20, 3 * block_bytes + (2 << 20))))

    kernel = functools.partial(
        classifier_kernel, b_tile=b_tile, C=C, K=K,
        hw_tile=hw_tile, hw_total=HW, need_mask=need_mask)

    return pl.pallas_call(
        kernel,
        out_shape=jax.ShapeDtypeStruct((B, K), jnp.float32),
        grid_spec=pltpu.PrefetchScalarGridSpec(
            num_scalar_prefetch=0,
            grid=grid,
            in_specs=[
                # (optional: pipeline_mode=pl.Buffered(3) if DMA latency is
                #  still exposed after the larger blocks)
                pl.BlockSpec((b_tile * C, hw_tile), lambda i, k: (i, k)),
                pl.BlockSpec((C, K), lambda i, k: (0, 0)),
                pl.BlockSpec((1, K), lambda i, k: (0, 0)),
            ],
            out_specs=pl.BlockSpec((b_tile, K), lambda i, k: (i, 0)),
            scratch_shapes=[pltpu.VMEM((b_tile * C, 1), jnp.float32)],
        ),
        compiler_params=pltpu.CompilerParams(
            dimension_semantics=("parallel", "arbitrary"),
            vmem_limit_bytes=vmem_limit),
    )(x2d, w_scaled, bias2d)


def _reference(x, weight, bias):
    return x.astype(jnp.float32).mean(axis=(2, 3)) @ weight + bias


if __name__ == "__main__":
    key = jax.random.PRNGKey(0)
    kx, kw, kb, kx2, kx3 = jax.random.split(key, 5)

    C, K = 3, 3
    weight = jax.random.normal(kw, (C, K), dtype=jnp.float32) * 0.1
    bias = jax.random.normal(kb, (K,), dtype=jnp.float32) * 0.01

    # Case 1: small shapes implied by ParamsClassification (input_dims=(3,S,S)).
    x1 = jax.random.normal(kx, (2, C, 16, 16), dtype=jnp.float32)
    o1 = classify(x1, weight, bias)
    jax.block_until_ready(o1)
    assert jnp.allclose(o1, _reference(x1, weight, bias), atol=1e-5, rtol=1e-4)

    # Case 2: multi-tile grid — parallel B-tiles x resident HW accumulator.
    x2 = jax.random.normal(kx2, (16, C, 64, 64), dtype=jnp.float32)
    o2 = classify(x2, weight, bias)
    jax.block_until_ready(o2)
    assert jnp.allclose(o2, _reference(x2, weight, bias), atol=1e-5, rtol=1e-4)

    # Case 3: non-128-divisible spatial size -> masked ragged HW tail path.
    x3 = jax.random.normal(kx3, (8, C, 20, 20), dtype=jnp.float32)
    o3 = classify(x3, weight, bias)
    jax.block_until_ready(o3)
    assert jnp.allclose(o3, _reference(x3, weight, bias), atol=1e-5, rtol=1e-4)

    # Case 4: bf16 input streamed at native width (no wrapper upcast).
    x4 = jax.random.normal(kx, (16, C, 32, 32), dtype=jnp.float32).astype(jnp.bfloat16)
    o4 = classify(x4, weight, bias)
    jax.block_until_ready(o4)
    assert jnp.allclose(o4, _reference(x4, weight, bias), atol=1e-4, rtol=1e-3)

    print("KERNEL_OK")
</pallas_src>

<mosaic_0001>
module attributes {stable_mosaic.version = 11 : i64} {
  func.func @classifier_kernel(%arg0: i32, %arg1: i32, %arg2: memref<6x256xf32, #tpu.memory_space<vmem>>, %arg3: memref<3x3xf32, #tpu.memory_space<vmem>>, %arg4: memref<1x3xf32, #tpu.memory_space<vmem>>, %arg5: memref<2x3xf32, #tpu.memory_space<vmem>>, %arg6: memref<6x1xf32, #tpu.memory_space<vmem>>) attributes {dimension_semantics = [#tpu.dimension_semantics<parallel>, #tpu.dimension_semantics<arbitrary>], iteration_bounds = array<i64: 1, 1>, scalar_prefetch = 0 : i64, scratch_operands = 1 : i64, tpu.core_type = #tpu.core_type<tc>, window_params = [{transform_indices = @transform_0, window_bounds = array<i64: 6, 256>}, {pipeline_mode = #tpu.pipeline_mode<synchronous>, transform_indices = @transform_1, window_bounds = array<i64: 3, 3>}, {pipeline_mode = #tpu.pipeline_mode<synchronous>, transform_indices = @transform_2, window_bounds = array<i64: 1, 3>}, {transform_indices = @transform_3, window_bounds = array<i64: 2, 3>}]} {
    %c0_i32 = arith.constant 0 : i32
    %0 = arith.cmpi eq, %arg1, %c0_i32 : i32
    %1 = arith.extui %0 : i1 to i32
    %c0_i32_0 = arith.constant 0 : i32
    %2 = arith.cmpi ne, %1, %c0_i32_0 : i32
    scf.if %2 {
      %cst_8 = arith.constant 0.000000e+00 : f32
      %12 = vector.broadcast %cst_8 : f32 to vector<6x1xf32>
      %c0_9 = arith.constant 0 : index
      %c0_10 = arith.constant 0 : index
      %13 = vector.load %arg6[%c0_9, %c0_10] : memref<6x1xf32, #tpu.memory_space<vmem>>, vector<6x1xf32>
      tpu.vector_store %arg6[%c0_9, %c0_10], %12 {strides = array<i32>} : memref<6x1xf32, #tpu.memory_space<vmem>>, vector<6x1xf32>,
    } else {
    }
    %c0 = arith.constant 0 : index
    %c0_1 = arith.constant 0 : index
    %3 = vector.load %arg2[%c0, %c0_1] : memref<6x256xf32, #tpu.memory_space<vmem>>, vector<6x256xf32>
    %c0_2 = arith.constant 0 : index
    %c0_3 = arith.constant 0 : index
    %4 = vector.load %arg6[%c0_2, %c0_3] : memref<6x1xf32, #tpu.memory_space<vmem>>, vector<6x1xf32>
    %cst = arith.constant dense<0.000000e+00> : vector<6xf32>
    %5 = vector.multi_reduction <add>, %3, %cst [1] : vector<6x256xf32> to vector<6xf32>
    %6 = vector.shape_cast %5 : vector<6xf32> to vector<6x1xf32>
    %7 = arith.addf %4, %6 : vector<6x1xf32>
    %c0_4 = arith.constant 0 : index
    %c0_5 = arith.constant 0 : index
    %8 = vector.load %arg6[%c0_4, %c0_5] : memref<6x1xf32, #tpu.memory_space<vmem>>, vector<6x1xf32>
    tpu.vector_store %arg6[%c0_4, %c0_5], %7 {strides = array<i32>} : memref<6x1xf32, #tpu.memory_space<vmem>>, vector<6x1xf32>,
    %c0_i32_6 = arith.constant 0 : i32
    %9 = arith.cmpi eq, %arg1, %c0_i32_6 : i32
    %10 = arith.extui %9 : i1 to i32
    %c0_i32_7 = arith.constant 0 : i32
    %11 = arith.cmpi ne, %10, %c0_i32_7 : i32
    scf.if %11 {
      %c0_8 = arith.constant 0 : index
      %c0_9 = arith.constant 0 : index
      %12 = vector.load %arg3[%c0_8, %c0_9] : memref<3x3xf32, #tpu.memory_space<vmem>>, vector<3x3xf32>
      %c0_10 = arith.constant 0 : index
      %c0_11 = arith.constant 0 : index
      %13 = vector.load %arg4[%c0_10, %c0_11] : memref<1x3xf32, #tpu.memory_space<vmem>>, vector<1x3xf32>
      %c0_12 = arith.constant 0 : index
      %c0_13 = arith.constant 0 : index
      %14 = tpu.strided_load %arg6[%c0_12, %c0_13] {strides = array<i32: 3, 1>} : memref<6x1xf32, #tpu.memory_space<vmem>>, vector<2x1xf32>
      %15 = vector.extract_strided_slice %12 {offsets = [0, 0], sizes = [1, 3], strides = [1, 1]} : vector<3x3xf32> to vector<1x3xf32>
      %16 = vector.broadcast %14 : vector<2x1xf32> to vector<2x3xf32>
      %17 = vector.broadcast %15 : vector<1x3xf32> to vector<2x3xf32>
      %18 = arith.mulf %16, %17 : vector<2x3xf32>
      %19 = vector.broadcast %13 : vector<1x3xf32> to vector<2x3xf32>
      %20 = arith.addf %19, %18 : vector<2x3xf32>
      %c1 = arith.constant 1 : index
      %c0_14 = arith.constant 0 : index
      %21 = tpu.strided_load %arg6[%c1, %c0_14] {strides = array<i32: 3, 1>} : memref<6x1xf32, #tpu.memory_space<vmem>>, vector<2x1xf32>
      %22 = vector.extract_strided_slice %12 {offsets = [1, 0], sizes = [1, 3], strides = [1, 1]} : vector<3x3xf32> to vector<1x3xf32>
      %23 = vector.broadcast %21 : vector<2x1xf32> to vector<2x3xf32>
      %24 = vector.broadcast %22 : vector<1x3xf32> to vector<2x3xf32>
      %25 = arith.mulf %23, %24 : vector<2x3xf32>
      %26 = arith.addf %20, %25 : vector<2x3xf32>
      %c2 = arith.constant 2 : index
      %c0_15 = arith.constant 0 : index
      %27 = tpu.strided_load %arg6[%c2, %c0_15] {strides = array<i32: 3, 1>} : memref<6x1xf32, #tpu.memory_space<vmem>>, vector<2x1xf32>
      %28 = vector.extract_strided_slice %12 {offsets = [2, 0], sizes = [1, 3], strides = [1, 1]} : vector<3x3xf32> to vector<1x3xf32>
      %29 = vector.broadcast %27 : vector<2x1xf32> to vector<2x3xf32>
      %30 = vector.broadcast %28 : vector<1x3xf32> to vector<2x3xf32>
      %31 = arith.mulf %29, %30 : vector<2x3xf32>
      %32 = arith.addf %26, %31 : vector<2x3xf32>
      %c0_16 = arith.constant 0 : index
      %c0_17 = arith.constant 0 : index
      %33 = vector.load %arg5[%c0_16, %c0_17] : memref<2x3xf32, #tpu.memory_space<vmem>>, vector<2x3xf32>
      tpu.vector_store %arg5[%c0_16, %c0_17], %32 {strides = array<i32>} : memref<2x3xf32, #tpu.memory_space<vmem>>, vector<2x3xf32>,
    } else {
    }
    return
  }
  func.func @transform_0(%arg0: i32, %arg1: i32) -> (i32, i32) {
    %c0_i32 = arith.constant 0 : i32
    return %arg0, %arg1 : i32, i32
  }
  func.func @transform_1(%arg0: i32, %arg1: i32) -> (i32, i32) {
    %c0_i32 = arith.constant 0 : i32
    %c0_i32_0 = arith.constant 0 : i32
    %c0_i32_1 = arith.constant 0 : i32
    return %c0_i32, %c0_i32_0 : i32, i32
  }
  func.func @transform_2(%arg0: i32, %arg1: i32) -> (i32, i32) {
    %c0_i32 = arith.constant 0 : i32
    %c0_i32_0 = arith.constant 0 : i32
    %c0_i32_1 = arith.constant 0 : i32
    return %c0_i32, %c0_i32_0 : i32, i32
  }
  func.func @transform_3(%arg0: i32, %arg1: i32) -> (i32, i32) {
    %c0_i32 = arith.constant 0 : i32
    %c0_i32_0 = arith.constant 0 : i32
    return %arg0, %c0_i32 : i32, i32
  }
}

</mosaic_0001>

<bundles_post_ra>
// kernel: tpu_custom_call.1
= control target key start
LH: loop header
LB: loop body
LE: loop exit
PB: predicated region body
PF: predicated region fallthrough
CT: control target
= control target key end

     0   :  { %8 = vsyncpa [#allocation4], 0  ;;  %s237_s0 = inlined_call_operand.hbm [shape: f32[6,256], index: 0, kind: input, shape index: {}]   ;;  %s238_s1 = inlined_call_operand.hbm [shape: f32[3,3], index: 1, kind: input, shape index: {}]   ;;  %s239_s2 = inlined_call_operand.vmem [shape: f32[1,3], index: 2, kind: input, shape index: {}]   ;;  %s240_s3 = inlined_call_operand.hbm [shape: f32[2,3], index: 3, kind: output, shape index: {}]  }
   0x1   :  { %9 = vsyncpa [#allocation7], 0 }
   0x2   :  { %10 = vsyncpa [#allocation5], 0  ;;  %s198_s12 = smov [#allocation3]   ;;  %s199_s14 = smov [#allocation6]  }
   0x3   :  { %s17_s13 = sshll.u32 %s198_s12, 4  ;;  %s27_s15 = sshll.u32 %s199_s14, 4  ;;  %s18_s13 = int_to_ptr.vmem [resolvable:$true] %s17_s13  ;;  %s28_s15 = int_to_ptr.vmem [resolvable:$true] %s27_s15 }
   0x4   :  { %s140_s16 = scalar_lea.vmem %s18_s13, 256  ;;  %p145_p1 = scmp.lt.s32.totalorder %s18_s13, %s18_s13 }
   0x5   :  { %p141_p0 = scmp.ne.s32.totalorder %s18_s13, %s140_s16  ;;  %p146_p2 = scmp.lt.s32.totalorder %s140_s16, %s140_s16 }
   0x7   :  { %p147_p3 = por %p146_p2, %p145_p1 }
   0x9   :  { %p148_p4 = pnand %p147_p3, %p141_p0 }
   0xb   :  { %151 = shalt.err (!%p148_p4)
}
   0xc   :  { %20 = dma.hbm_to_vmem [thread:$0]  %s237_s0, 256, %s18_s13, [#allocation4]  }
   0xd   :  { %s160_s19 = scalar_lea.vmem %s28_s15, 64  ;;  %p165_p6 = scmp.lt.s32.totalorder %s28_s15, %s28_s15 }
   0xe   :  { %p161_p5 = scmp.ne.s32.totalorder %s28_s15, %s160_s19  ;;  %p166_p7 = scmp.lt.s32.totalorder %s160_s19, %s160_s19 }
  0x10   :  { %p167_p8 = por %p166_p7, %p165_p6 }
  0x12   :  { %p168_p9 = pnand %p167_p8, %p161_p5 }
  0x14   :  { %171 = shalt.err (!%p168_p9)
}
  0x15   :  { %30 = dma.hbm_to_vmem [thread:$0]  %s238_s1, 64, %s28_s15, [#allocation7]  }
  0x16   :  { %192 = dma.done.wait [#allocation4], 256  }
  0x17   :  { %193 = vsyncadd [#allocation4], 4294967040 }
  0x18   :  { %194 = dma.done.wait [#allocation7], 64  }
  0x19   :  { %195 = vsyncadd [#allocation7], 4294967232  ;;  %vm43_vm0 = vcmask 5120   ;;  %v200_v0 = vmov 0.0   ;;  %vm48_vm1 = vcmask 1045504   ;;  %v201_v6 = vmov 0  }
  0x1a   :  { %44 = vst.msk [vmem:[#allocation2] sm:$0x3f] %vm43_vm0, %v200_v0  ;;  %v45_v1 = vld [vmem:[#allocation3] sm:$0x3f]  ;;  %v46_v2 = vld [vmem:[#allocation3 + $0x8] sm:$0x3f]  ;;  %131 = vset.pattern.permute.xlu1 %v201_v6  ;;  %130 = vset.pattern.permute.xlu0 %v201_v6  ;;  %v68_v13 = vlaneseq }
  0x1b   :  { %v49_v3 = vsel %vm48_vm1, %v45_v1, 0.0  ;;  %v50_v4 = vsel %vm48_vm1, %v46_v2, 0.0  ;;  %v60_v16 = vld [vmem:[#allocation6] sm:$0x7]  ;;  %v124_v22 = vld [vmem:[%s239_s2] ss:$0 sm:$0xff] }
  0x1c   :  { %v51_v5 = vadd.f32 %v50_v4, %v49_v3  ;;  %v69_v14 = vshrl.u32 %v68_v13, 7  ;;  %s202_s22 = smov [#allocation8]   ;;  %vm106_vm2 = vcmask 17408  }
  0x1d   :  { %s114_s23 = sshll.u32 %s202_s22, 4  ;;  %s115_s23 = int_to_ptr.vmem [resolvable:$true] %s114_s23 }
  0x1e   :  { %52 = vadd.xlane.f32.xlu0 %v51_v5  ;;  %v70_v15 = vsub.s32 0, %v69_v14  ;;  %v89_v17 = vsub.s32 1, %v69_v14  ;;  %v102_v19 = vsub.s32 2, %v69_v14  ;;  %s172_s24 = scalar_lea.vmem %s115_s23, 32  ;;  %p177_p11 = scmp.lt.s32.totalorder %s115_s23, %s115_s23 }
  0x1f   :  { %p173_p10 = scmp.ne.s32.totalorder %s115_s23, %s172_s24  ;;  %p178_p12 = scmp.lt.s32.totalorder %s172_s24, %s172_s24 }
  0x20   :  { %v71_v18 = vrot.slane %v60_v16, %v70_v15  ;;  %v90_v20 = vrot.slane %v60_v16, %v89_v17  ;;  %v103_v25 = vrot.slane %v60_v16, %v102_v19 }
  0x21   :  { %v47_v7 = vld [vmem:[#allocation2] sm:$0x3f]  ;;  %p179_p13 = por %p178_p12, %p177_p11 }
  0x23   :  { %p180_p0 = pnand %p179_p13, %p173_p10 }
  0xa7   :  { %v53_v8 = vpop.xlane.xlu0 %52 }
  0xa8   :  { %v54_v9 = vadd.f32 %v53_v8, %v47_v7 }
  0xaa   :  { %56 = vst.msk [vmem:[#allocation2] sm:$0x3f] %vm43_vm0, %v54_v9 }
  0xb1   :  { %v81_v10 = vld [vmem:[#allocation2 + $0x1] ss:$3 sm:$0x3]  ;;  %v62_v11 = vld [vmem:[#allocation2] ss:$3 sm:$0x3] }
  0xb2   :  { %84 = vperm.xlu1 %131, %v81_v10   ;;  %65 = vperm.xlu0 %130, %v62_v11   ;;  %v94_v12 = vld [vmem:[#allocation2 + $0x2] ss:$3 sm:$0x3] }
  0xb6   :  { %97 = vperm.xlu1 %131, %v94_v12  }
 0x12d   :  { %v85_v21 = vpop.permute.xlu1 %84  ;;  %v66_v23 = vpop.permute.xlu0 %65 }
 0x12e   :  { %v72_v24 = vmul.f32 %v71_v18, %v66_v23  ;;  %v91_v26 = vmul.f32 %v90_v20, %v85_v21 }
 0x130   :  { %v79_v27 = vadd.f32 %v124_v22, %v72_v24 }
 0x131   :  { %v98_v28 = vpop.permute.xlu1 %97 }
 0x132   :  { %v92_v29 = vadd.f32 %v91_v26, %v79_v27  ;;  %v104_v30 = vmul.f32 %v103_v25, %v98_v28 }
 0x134   :  { %v105_v31 = vadd.f32 %v104_v30, %v92_v29 }
 0x136   :  { %107 = vst.msk [vmem:[#allocation8] sm:$0x3] %vm106_vm2, %v105_v31 }
 0x137   :  { %183 = shalt.err (!%p180_p0)
}
 0x138   :  { %117 = dma.vmem_to_hbm [thread:$0]  %s115_s23, 32, %s240_s3, [#allocation5]  }
 0x139   :  { %196 = dma.done.wait [#allocation5], 32  }
 0x13a   :  { %197 = vsyncadd [#allocation5], 4294967264 }
 0x13b   :  { %121 = vsyncpa [#allocation4], 1 }
 0x13c   :  { %122 = vsyncpa [#allocation7], 1 }
 0x13d   :  { %123 = vsyncpa [#allocation5], 1 }

</bundles_post_ra>
